<compile_context>
chip_gen: v7x
topology: tpu7x:2x2x1
jax: 0.10.0
libtpu: 0.0.40
codegen_flags: <defaults>
</compile_context>

<pallas_src>
import jax
import jax.numpy as jnp
from jax import lax
from jax.experimental import pallas as pl
from jax.experimental.pallas import tpu as pltpu

_EPS = 1e-8          # matches torch.nn.functional.cosine_similarity default eps
_SUBLANE = 8
_LANE = 128


def _round_up(x, m):
    return ((x + m - 1) // m) * m


def _pick_tile_b(B, D, feat_itemsize, vmem_budget_bytes):
    """Largest batch tile (multiple of 8, <=1024) whose double-buffered inputs fit the budget."""
    # 2 feature inputs x 2 pipeline buffers x D x itemsize
    # + label column padded to 128 lanes, double buffered (f32).
    per_row = 2 * 2 * D * feat_itemsize + 2 * _LANE * 4
    t = max(_SUBLANE, (vmem_budget_bytes // per_row) // _SUBLANE * _SUBLANE)
    t = min(t, 1024, _round_up(B, _SUBLANE))
    return int(t)


def _make_contrast_kernel(tile_b, valid_b):
    """Build the kernel; the ragged-edge mask is only emitted when actually needed."""
    need_mask = (valid_b % tile_b) != 0

    def kernel(a_ref, r_ref, lbl_ref, out_ref):
        a = a_ref[...].astype(jnp.float32)      # (TB, D)
        r = r_ref[...].astype(jnp.float32)      # (TB, D)
        lbl = lbl_ref[...].astype(jnp.float32)  # (TB, 1)

        dot = jnp.sum(a * r, axis=-1, keepdims=True)   # (TB, 1)
        aa = jnp.sum(a * a, axis=-1, keepdims=True)    # (TB, 1)
        rr = jnp.sum(r * r, axis=-1, keepdims=True)    # (TB, 1)

        # 1 / max(|a|*|r|, eps) == rsqrt(max(|a|^2*|r|^2, eps^2))  (EUP, no sqrt+div)
        inv_norm = lax.rsqrt(jnp.maximum(aa * rr, jnp.float32(_EPS * _EPS)))
        tile_loss = -(dot * inv_norm) * lbl            # (TB, 1)

        if need_mask:
            # Last tile over-runs the batch: rows >= valid_b hold unspecified VMEM data
            # (possibly NaN/inf) — select them away before reducing.
            row = lax.broadcasted_iota(jnp.int32, tile_loss.shape, 0)
            valid = (row + pl.program_id(0) * tile_b) < valid_b
            tile_loss = jnp.where(valid, tile_loss, jnp.float32(0.0))

        partial = jnp.sum(tile_loss, axis=0, keepdims=True)        # (1, 1)
        # Lane-dense, unmasked store of this tile's partial sum; each grid step owns a
        # unique (8,128) block, so the grid axis stays "parallel" / megacore-safe.
        out_ref[...] = jnp.broadcast_to(partial, out_ref.shape)    # (8, 128)

    return kernel


def contrast_loss(anchor_fea, reassembly_fea, contrast_label, *,
                  tile_b=None,
                  vmem_budget_bytes=20 * 1024 * 1024,
                  vmem_limit_bytes=32 * 1024 * 1024):
    """anchor_fea, reassembly_fea: (..., D) f32/bf16; contrast_label: (...,). Scalar f32."""
    assert anchor_fea.shape == reassembly_fea.shape
    D = anchor_fea.shape[-1]
    a2d = anchor_fea.reshape(-1, D)
    r2d = reassembly_fea.reshape(-1, D)
    B = a2d.shape[0]
    lbl_col = contrast_label.reshape(-1).astype(jnp.float32)
    assert lbl_col.shape[0] == B
    lbl_col = lbl_col.reshape(B, 1)

    feat_itemsize = jnp.dtype(a2d.dtype).itemsize
    if tile_b is None:
        tile_b = _pick_tile_b(B, D, feat_itemsize, vmem_budget_bytes)
    else:
        tile_b = max(_SUBLANE, _round_up(int(tile_b), _SUBLANE))

    num_tiles = pl.cdiv(B, tile_b)

    out = pl.pallas_call(
        _make_contrast_kernel(tile_b, B),
        out_shape=jax.ShapeDtypeStruct((num_tiles * _SUBLANE, _LANE), jnp.float32),
        grid_spec=pltpu.PrefetchScalarGridSpec(
            num_scalar_prefetch=0,
            grid=(num_tiles,),
            in_specs=[
                pl.BlockSpec((tile_b, D), lambda i: (i, 0)),
                pl.BlockSpec((tile_b, D), lambda i: (i, 0)),
                pl.BlockSpec((tile_b, 1), lambda i: (i, 0)),
            ],
            out_specs=pl.BlockSpec((_SUBLANE, _LANE), lambda i: (i, 0)),
        ),
        compiler_params=pltpu.CompilerParams(
            dimension_semantics=("parallel",),
            vmem_limit_bytes=vmem_limit_bytes,
        ),
    )(a2d, r2d, lbl_col)

    # One partial sum per tile, at sublane 0 / lane 0 of its (8,128) block.
    partials = out.reshape(num_tiles, _SUBLANE, _LANE)[:, 0, 0]   # (num_tiles,)
    return jnp.sum(partials) / jnp.float32(B)                     # mean over the real batch


def _reference(anchor_fea, reassembly_fea, contrast_label):
    a = anchor_fea.astype(jnp.float32)
    r = reassembly_fea.astype(jnp.float32)
    lbl = contrast_label.astype(jnp.float32)
    dot = jnp.sum(a * r, axis=-1)
    denom = jnp.maximum(jnp.linalg.norm(a, axis=-1) * jnp.linalg.norm(r, axis=-1), _EPS)
    loss = -(dot / denom) * lbl
    return jnp.mean(loss)


if __name__ == "__main__":
    key = jax.random.PRNGKey(0)
    k1, k2, k3 = jax.random.split(key, 3)

    # Small case (single grid step; tile auto-sizing picks the whole batch).
    B, D = 16, 128
    anchor_fea = jax.random.normal(k1, (B, D), dtype=jnp.float32)
    reassembly_fea = jax.random.normal(k2, (B, D), dtype=jnp.float32)
    contrast_label = jax.random.bernoulli(k3, 0.5, (B,)).astype(jnp.int32)

    result = contrast_loss(anchor_fea, reassembly_fea, contrast_label)
    jax.block_until_ready(result)
    ref = _reference(anchor_fea, reassembly_fea, contrast_label)
    assert jnp.allclose(result, ref, atol=1e-5, rtol=1e-5), (result, ref)

    # Multi-tile + ragged batch (in-kernel mask path) + bf16 inputs + parallel grid.
    B2, D2 = 200, 256
    a2 = jax.random.normal(k1, (B2, D2), dtype=jnp.float32).astype(jnp.bfloat16)
    r2 = jax.random.normal(k2, (B2, D2), dtype=jnp.float32).astype(jnp.bfloat16)
    l2 = jax.random.bernoulli(k3, 0.5, (B2,)).astype(jnp.float32)

    result2 = contrast_loss(a2, r2, l2, tile_b=64)
    jax.block_until_ready(result2)
    ref2 = _reference(a2, r2, l2)
    assert jnp.allclose(result2, ref2, atol=1e-4, rtol=1e-4), (result2, ref2)

    print("KERNEL_OK")
</pallas_src>

<mosaic_0001>
module attributes {stable_mosaic.version = 11 : i64} {
  func.func @kernel(%arg0: i32, %arg1: memref<16x128xf32, #tpu.memory_space<vmem>>, %arg2: memref<16x128xf32, #tpu.memory_space<vmem>>, %arg3: memref<16x1xf32, #tpu.memory_space<vmem>>, %arg4: memref<8x128xf32, #tpu.memory_space<vmem>>) attributes {dimension_semantics = [#tpu.dimension_semantics<parallel>], iteration_bounds = array<i64: 1>, scalar_prefetch = 0 : i64, scratch_operands = 0 : i64, tpu.core_type = #tpu.core_type<tc>, window_params = [{transform_indices = @transform_0, window_bounds = array<i64: 16, 128>}, {transform_indices = @transform_1, window_bounds = array<i64: 16, 128>}, {transform_indices = @transform_2, window_bounds = array<i64: 16, 1>}, {transform_indices = @transform_3, window_bounds = array<i64: 8, 128>}]} {
    %c0 = arith.constant 0 : index
    %c0_0 = arith.constant 0 : index
    %0 = vector.load %arg1[%c0, %c0_0] : memref<16x128xf32, #tpu.memory_space<vmem>>, vector<16x128xf32>
    %c0_1 = arith.constant 0 : index
    %c0_2 = arith.constant 0 : index
    %1 = vector.load %arg2[%c0_1, %c0_2] : memref<16x128xf32, #tpu.memory_space<vmem>>, vector<16x128xf32>
    %c0_3 = arith.constant 0 : index
    %c0_4 = arith.constant 0 : index
    %2 = vector.load %arg3[%c0_3, %c0_4] : memref<16x1xf32, #tpu.memory_space<vmem>>, vector<16x1xf32>
    %3 = arith.mulf %0, %1 : vector<16x128xf32>
    %cst = arith.constant dense<0.000000e+00> : vector<16xf32>
    %4 = vector.multi_reduction <add>, %3, %cst [1] : vector<16x128xf32> to vector<16xf32>
    %5 = vector.shape_cast %4 : vector<16xf32> to vector<16x1xf32>
    %6 = arith.mulf %0, %0 : vector<16x128xf32>
    %cst_5 = arith.constant dense<0.000000e+00> : vector<16xf32>
    %7 = vector.multi_reduction <add>, %6, %cst_5 [1] : vector<16x128xf32> to vector<16xf32>
    %8 = vector.shape_cast %7 : vector<16xf32> to vector<16x1xf32>
    %9 = arith.mulf %1, %1 : vector<16x128xf32>
    %cst_6 = arith.constant dense<0.000000e+00> : vector<16xf32>
    %10 = vector.multi_reduction <add>, %9, %cst_6 [1] : vector<16x128xf32> to vector<16xf32>
    %11 = vector.shape_cast %10 : vector<16xf32> to vector<16x1xf32>
    %12 = arith.mulf %8, %11 : vector<16x1xf32>
    %cst_7 = arith.constant 1.000000e-16 : f32
    %13 = vector.broadcast %cst_7 : f32 to vector<16x1xf32>
    %14 = arith.maximumf %12, %13 : vector<16x1xf32>
    %15 = math.rsqrt %14 : vector<16x1xf32>
    %16 = arith.mulf %5, %15 : vector<16x1xf32>
    %cst_8 = arith.constant 0.000000e+00 : f32
    %17 = vector.broadcast %cst_8 : f32 to vector<16x1xf32>
    %18 = arith.subf %17, %16 : vector<16x1xf32>
    %19 = arith.mulf %18, %2 : vector<16x1xf32>
    %cst_9 = arith.constant dense<0.000000e+00> : vector<1xf32>
    %20 = vector.multi_reduction <add>, %19, %cst_9 [0] : vector<16x1xf32> to vector<1xf32>
    %21 = vector.shape_cast %20 : vector<1xf32> to vector<1x1xf32>
    %22 = vector.shape_cast %21 : vector<1x1xf32> to vector<1x1xf32>
    %23 = vector.broadcast %22 : vector<1x1xf32> to vector<8x128xf32>
    %c0_10 = arith.constant 0 : index
    %c0_11 = arith.constant 0 : index
    %24 = vector.load %arg4[%c0_10, %c0_11] : memref<8x128xf32, #tpu.memory_space<vmem>>, vector<8x128xf32>
    tpu.vector_store %arg4[%c0_10, %c0_11], %23 {strides = array<i32>} : memref<8x128xf32, #tpu.memory_space<vmem>>, vector<8x128xf32>,
    return
  }
  func.func @transform_0(%arg0: i32) -> (i32, i32) {
    %c0_i32 = arith.constant 0 : i32
    %c0_i32_0 = arith.constant 0 : i32
    return %arg0, %c0_i32 : i32, i32
  }
  func.func @transform_1(%arg0: i32) -> (i32, i32) {
    %c0_i32 = arith.constant 0 : i32
    %c0_i32_0 = arith.constant 0 : i32
    return %arg0, %c0_i32 : i32, i32
  }
  func.func @transform_2(%arg0: i32) -> (i32, i32) {
    %c0_i32 = arith.constant 0 : i32
    %c0_i32_0 = arith.constant 0 : i32
    return %arg0, %c0_i32 : i32, i32
  }
  func.func @transform_3(%arg0: i32) -> (i32, i32) {
    %c0_i32 = arith.constant 0 : i32
    %c0_i32_0 = arith.constant 0 : i32
    return %arg0, %c0_i32 : i32, i32
  }
}

</mosaic_0001>

<bundles_post_ra>
// kernel: tpu_custom_call.1
= control target key start
LH: loop header
LB: loop body
LE: loop exit
PB: predicated region body
PF: predicated region fallthrough
CT: control target
= control target key end

     0   :  { %8 = vsyncpa [#allocation3], 0  ;;  %s215_s0 = inlined_call_operand.vmem [shape: f32[16,128], index: 0, kind: input, shape index: {}]   ;;  %s216_s1 = inlined_call_operand.hbm [shape: f32[16,128], index: 1, kind: input, shape index: {}]   ;;  %s217_s2 = inlined_call_operand.vmem [shape: f32[16,1], index: 2, kind: input, shape index: {}]   ;;  %s218_s3 = inlined_call_operand.hbm [shape: f32[8,128], index: 3, kind: output, shape index: {}]  }
   0x1   :  { %9 = vsyncpa [#allocation4], 0  ;;  %s154_s12 = smov [#allocation2]   ;;  %s106_s16 = scalar_lea.hbm %s216_s1, 256 }
   0x2   :  { %s17_s13 = sshll.u32 %s154_s12, 4  ;;  %p107_p0 = scmp.ne.s32.totalorder %s216_s1, %s106_s16  ;;  %s18_s13 = int_to_ptr.vmem [resolvable:$true] %s17_s13 }
   0x3   :  { %p110_p1 = scmp.lt.u32.totalorder %s106_s16, %s216_s1 }
   0x5   :  { %p112_p2 = pnand %p110_p1, %p107_p0 }
   0x7   :  { %115 = shalt.err (!%p112_p2)
}
   0x8   :  { %s116_s21 = scalar_lea.vmem %s18_s13, 256  ;;  %p121_p4 = scmp.lt.s32.totalorder %s18_s13, %s18_s13 }
   0x9   :  { %p117_p3 = scmp.ne.s32.totalorder %s18_s13, %s116_s21  ;;  %p122_p5 = scmp.lt.s32.totalorder %s116_s21, %s116_s21 }
   0xb   :  { %p123_p6 = por %p122_p5, %p121_p4 }
   0xd   :  { %p124_p7 = pnand %p123_p6, %p117_p3 }
   0xf   :  { %127 = shalt.err (!%p124_p7)
}
  0x10   :  { %s155_s22 = smov 128   ;;  %s156_s23 = smov 8  }
  0x11   :  { %23 = dma.hbm_to_vmem [thread:$0]  %s216_s1, 256, %s18_s13, [#allocation3], %s155_s22, %s155_s22, %s156_s23  }
  0x12   :  { %150 = dma.done.wait [#allocation3], 256  }
  0x13   :  { %151 = vsyncadd [#allocation3], 4294967040  ;;  %v31_v0 = vld [vmem:[#allocation2] sm:$0xff]  ;;  %v32_v2 = vld [vmem:[#allocation2 + $0x8] sm:$0xff]  ;;  %v157_v10 = vmov 0   ;;  %vm65_vm0 = vcmask 7168  }
  0x14   :  { %v29_v1 = vld [vmem:[%s215_s0] sm:$0xff]  ;;  %v47_v3 = vmul.f32 %v31_v0, %v31_v0  ;;  %v30_v5 = vld [vmem:[%s215_s0 + $0x8] sm:$0xff]  ;;  %v48_v6 = vmul.f32 %v32_v2, %v32_v2  ;;  %101 = vset.pattern.permute.xlu0 %v157_v10  ;;  %s158_s5 = smov [#allocation5]  }
  0x15   :  { %v41_v4 = vmul.f32 %v29_v1, %v29_v1  ;;  %v42_v7 = vmul.f32 %v30_v5, %v30_v5  ;;  %v35_v8 = vmul.f32 %v31_v0, %v29_v1  ;;  %v36_v9 = vmul.f32 %v32_v2, %v30_v5  ;;  %v33_v25 = vld [vmem:[%s217_s2] sm:$0xff]  ;;  %v34_v27 = vld [vmem:[%s217_s2 + $0x8] sm:$0xff]  ;;  %s87_s6 = sshll.u32 %s158_s5, 4  ;;  %s88_s6 = int_to_ptr.vmem [resolvable:$true] %s87_s6 }
  0x16   :  { %49 = vadd.xlane.f32.xlu1 %v47_v3  ;;  %s128_s2 = scalar_lea.vmem %s88_s6, 128  ;;  %p133_p9 = scmp.lt.s32.totalorder %s88_s6, %s88_s6 }
  0x17   :  { %43 = vadd.xlane.f32.xlu0 %v41_v4  ;;  %p129_p8 = scmp.ne.s32.totalorder %s88_s6, %s128_s2  ;;  %p134_p10 = scmp.lt.s32.totalorder %s128_s2, %s128_s2 }
  0x19   :  { %p135_p11 = por %p134_p10, %p133_p9 }
  0x1a   :  { %51 = vadd.xlane.f32.xlu1 %v48_v6 }
  0x1b   :  { %45 = vadd.xlane.f32.xlu0 %v42_v7  ;;  %p136_p12 = pnand %p135_p11, %p129_p8 }
  0x1e   :  { %39 = vadd.xlane.f32.xlu1 %v36_v9 }
  0x1f   :  { %37 = vadd.xlane.f32.xlu0 %v35_v8 }
  0xa3   :  { %v50_v11 = vpop.xlane.xlu1 %49 }
  0xa4   :  { %v44_v12 = vpop.xlane.xlu0 %43 }
  0xa5   :  { %v53_v13 = vmul.f32 %v50_v11, %v44_v12 }
  0xa7   :  { %v55_v14 = vmax.f32 %v53_v13, 1e-16  ;;  %v52_v15 = vpop.xlane.xlu1 %51 }
  0xa8   :  { %v46_v16 = vpop.xlane.xlu0 %45 }
  0xa9   :  { %102 = vrsqrt.f32 %v55_v14  ;;  %v54_v17 = vmul.f32 %v52_v15, %v46_v16 }
  0xab   :  { %v56_v18 = vmax.f32 %v54_v17, 1e-16  ;;  %v40_v22 = vpop.xlane.xlu1 %39 }
  0xac   :  { %v38_v19 = vpop.xlane.xlu0 %37 }
  0xad   :  { %104 = vrsqrt.f32 %v56_v18 }
  0xb3   :  { %v103_v20 = vpop.eup %102 }
  0xb4   :  { %v59_v21 = vmul.f32 %v103_v20, %v38_v19 }
  0xb6   :  { %v61_v23 = vsub.f32 0.0, %v59_v21 }
  0xb7   :  { %v105_v24 = vpop.eup %104 }
  0xb8   :  { %v60_v26 = vmul.f32 %v105_v24, %v40_v22  ;;  %v63_v28 = vmul.f32 %v61_v23, %v33_v25 }
  0xba   :  { %v62_v29 = vsub.f32 0.0, %v60_v26  ;;  %v66_v31 = vsel %vm65_vm0, %v63_v28, 0.0 }
  0xbc   :  { %v64_v30 = vmul.f32 %v62_v29, %v34_v27 }
  0xbe   :  { %v67_v32 = vsel %vm65_vm0, %v64_v30, 0.0 }
  0xbf   :  { %v68_v33 = vadd.f32 %v67_v32, %v66_v31 }
  0xc1   :  { %v69_v34 = vrot.slane %v68_v33, 4 }
  0xc3   :  { %v70_v35 = vadd.f32 %v69_v34, %v68_v33 }
  0xc5   :  { %v71_v36 = vrot.slane %v70_v35, 2 }
  0xc7   :  { %v72_v37 = vadd.f32 %v71_v36, %v70_v35 }
  0xc9   :  { %v73_v38 = vrot.slane %v72_v37, 1 }
  0xcb   :  { %v74_v39 = vadd.f32 %v73_v38, %v72_v37 }
  0xcd   :  { %77 = vperm.xlu0 %101, %v74_v39  }
 0x14c   :  { %v78_v40 = vpop.permute.xlu0 %77 }
 0x14d   :  { %80 = vst [vmem:[#allocation5] sm:$0xff] %v78_v40 }
 0x14e   :  { %139 = shalt.err (!%p136_p12)
}
 0x14f   :  { %s140_s9 = scalar_lea.hbm %s218_s3, 128 }
 0x150   :  { %p141_p13 = scmp.ne.s32.totalorder %s218_s3, %s140_s9  ;;  %p144_p0 = scmp.lt.u32.totalorder %s140_s9, %s218_s3 }
 0x152   :  { %p146_p1 = pnand %p144_p0, %p141_p13 }
 0x154   :  { %149 = shalt.err (!%p146_p1)
}
 0x155   :  { %90 = dma.vmem_to_hbm [thread:$0]  %s88_s6, 128, %s218_s3, [#allocation4]  }
 0x156   :  { %152 = dma.done.wait [#allocation4], 128  }
 0x157   :  { %153 = vsyncadd [#allocation4], 4294967168 }
 0x158   :  { %94 = vsyncpa [#allocation3], 1 }
 0x159   :  { %95 = vsyncpa [#allocation4], 1 }

</bundles_post_ra>
